<compile_context>
chip_gen: v5e
topology: v5e:2x2
jax: 0.10.0
libtpu: 0.0.40
codegen_flags: <defaults>
</compile_context>

<pallas_src>
import math

import jax
import jax.numpy as jnp
from jax.experimental import pallas as pl
from jax.experimental.pallas import tpu as pltpu

LEAKY_SLOPE = 0.01  # nn.LeakyReLU default negative_slope
LANE = 128


def _leaky_relu(x):
    return jnp.where(x > 0, x, LEAKY_SLOPE * x)


def ff_kernel(x_ref, w1_ref, b1_ref, w2_ref, b2_ref, w3_ref, b3_ref,
              ws_ref, bs_ref, o_ref):
    # x_ref: (tb, Dp) f32 batch tile; w*: (Dp, Dp) bf16 (resident); b*: (1, Dp) f32.
    x = x_ref[...].astype(w1_ref.dtype)  # in-kernel f32 -> bf16 cast (no extra HBM pass)

    h = jnp.dot(x, w1_ref[...], preferred_element_type=jnp.float32) + b1_ref[...]
    h = _leaky_relu(h)
    h = jnp.dot(h.astype(w2_ref.dtype), w2_ref[...],
                preferred_element_type=jnp.float32) + b2_ref[...]
    h = _leaky_relu(h)
    h = jnp.dot(h.astype(w3_ref.dtype), w3_ref[...],
                preferred_element_type=jnp.float32) + b3_ref[...]
    h = _leaky_relu(h)  # Sequential ends with LeakyReLU

    shortcut = jnp.dot(x, ws_ref[...], preferred_element_type=jnp.float32) + bs_ref[...]

    o_ref[...] = (h + shortcut).astype(o_ref.dtype)


def _vmem_limit_bytes():
    """Per-generation scoped-VMEM limit (~100 MiB v5e/v6e, ~51 MiB v7x per core)."""
    cap = 64 * 1024 * 1024  # conservative fallback = v7x per-TensorCore VMEM
    try:
        info = pltpu.get_tpu_info()
        c = getattr(info, "vmem_capacity_bytes", None)
        if c:
            cap = int(c)
    except Exception:
        pass
    return int(cap * 0.8)  # leave headroom for compiler-internal scratch


def _choose_batch_tile(B, Dp, requested, budget_bytes, x_buffers, out_itemsize,
                       weight_itemsize):
    """Largest MXU-aligned batch tile that fits the VMEM budget next to the weights."""
    # Resident weights/biases are single-buffered (pl.Buffered(1)).
    weight_bytes = 4 * Dp * Dp * weight_itemsize + 4 * Dp * 4
    avail = budget_bytes - weight_bytes
    if avail <= (1 << 20):
        # TODO(synk): K/N-tiled fallback (grid over D chunks + f32 VMEM accumulator).
        raise NotImplementedError(
            f"input_dim(padded)={Dp}: resident weights ({weight_bytes} B) exceed the "
            f"VMEM budget ({budget_bytes} B); a K/N-tiled kernel is required.")
    # Per streamed row: x (f32, x_buffers copies) + out (2 copies) + ~16 B/elem of
    # in-kernel f32/bf16 intermediates (h, shortcut, bf16 casts).
    per_row = Dp * (4 * x_buffers + 2 * out_itemsize + 16)
    cap = max(8, avail // per_row)

    tb = requested if requested is not None else 1024
    tb = min(tb, cap, B)
    if tb >= B:
        return B                        # one block spanning the full batch is always legal
    if tb >= 256:
        tb = (tb // 256) * 256          # full-width M tiles for 2x256^2 MXU (v6e/v7x)
    elif tb >= 128:
        tb = 128                        # v5e 4x128^2 MXU tile
    else:
        tb = max(16, (tb // 16) * 16)   # keep sublane-dim friendly for bf16/f32 blocks
    return tb


def prepare_ff_params(params, *, weight_dtype=jnp.bfloat16):
    """One-time setup: cast weights (already (in,out)) to bf16 and zero-pad the feature
    dim up to a multiple of 128 so all loads/stores are lane-dense.  Returns
    (prepared_params, D, Dp)."""
    w1, b1, w2, b2, w3, b3, ws, bs = params
    D = w1.shape[0]
    Dp = ((D + LANE - 1) // LANE) * LANE

    def prep_w(w):
        w = w.astype(weight_dtype)
        if Dp != D:
            w = jnp.pad(w, ((0, Dp - D), (0, Dp - D)))
        return w

    def prep_b(b):
        b = jnp.reshape(b.astype(jnp.float32), (1, -1))
        if Dp != D:
            b = jnp.pad(b, ((0, 0), (0, Dp - D)))
        return b

    prepped = (prep_w(w1), prep_b(b1), prep_w(w2), prep_b(b2),
               prep_w(w3), prep_b(b3), prep_w(ws), prep_b(bs))
    return prepped, D, Dp


def ff_forward(x, prepared, *, batch_tile=None, out_dtype=jnp.bfloat16,
               x_buffers=2, single_buffer_weights=True):
    """x: (B, D) float32.  prepared: output of prepare_ff_params(params)."""
    params_p, D, Dp = prepared
    B = x.shape[0]
    assert x.shape[1] == D, (x.shape, D)

    x = x.astype(jnp.float32)
    if Dp != D:
        # Lane pad (only when D is not already a multiple of 128); padded columns stay 0
        # through every layer because the padded weight rows/cols and biases are 0.
        x = jnp.pad(x, ((0, 0), (0, Dp - D)))

    weight_itemsize = jnp.dtype(params_p[0].dtype).itemsize
    out_itemsize = jnp.dtype(out_dtype).itemsize
    vmem_limit = _vmem_limit_bytes()
    budget = max(vmem_limit - (2 << 20), 1 << 20)
    tb = _choose_batch_tile(B, Dp, batch_tile, budget, x_buffers, out_itemsize,
                            weight_itemsize)
    grid = (pl.cdiv(B, tb),)  # no batch padding: Pallas masks the ragged last block

    def x_map(i):
        return (i, 0)

    def const_map(i):
        return (0, 0)

    def make_spec(shape, index_map, buffers):
        if buffers is not None:
            return pl.BlockSpec(shape, index_map, pipeline_mode=pl.Buffered(buffers))
        return pl.BlockSpec(shape, index_map)

    def run(use_pipeline_mode):
        w_buf = 1 if (use_pipeline_mode and single_buffer_weights) else None
        x_buf = x_buffers if (use_pipeline_mode and x_buffers != 2) else None
        in_specs = [
            make_spec((tb, Dp), x_map, x_buf),      # x: streamed batch tiles
            make_spec((Dp, Dp), const_map, w_buf),  # w1 (VMEM-resident, single-buffered)
            make_spec((1, Dp), const_map, w_buf),   # b1
            make_spec((Dp, Dp), const_map, w_buf),  # w2
            make_spec((1, Dp), const_map, w_buf),   # b2
            make_spec((Dp, Dp), const_map, w_buf),  # w3
            make_spec((1, Dp), const_map, w_buf),   # b3
            make_spec((Dp, Dp), const_map, w_buf),  # w_shortcut
            make_spec((1, Dp), const_map, w_buf),   # b_shortcut
        ]
        out = pl.pallas_call(
            ff_kernel,
            out_shape=jax.ShapeDtypeStruct((B, Dp), out_dtype),
            grid_spec=pltpu.PrefetchScalarGridSpec(
                num_scalar_prefetch=0,
                grid=grid,
                in_specs=in_specs,
                out_specs=pl.BlockSpec((tb, Dp), x_map),
            ),
            compiler_params=pltpu.CompilerParams(
                dimension_semantics=("parallel",),   # megacore sharding over batch tiles
                vmem_limit_bytes=vmem_limit,
            ),
        )(x, *params_p)
        return jax.block_until_ready(out)

    out = None
    if single_buffer_weights or x_buffers != 2:
        try:
            out = run(True)
        except Exception:
            out = None  # pipeline_mode/Buffered unsupported here -> default double-buffering
    if out is None:
        out = run(False)

    return out[:, :D] if Dp != D else out


def init_ff_params(key, input_dim):
    """Deterministic init mirroring nn.Linear's kaiming-uniform scheme.
    Weights are stored already transposed to (in, out)."""
    params = []
    fan_in = input_dim
    bound_w = math.sqrt(1.0 / fan_in) * math.sqrt(3.0)  # kaiming_uniform(a=sqrt(5))
    bound_b = 1.0 / math.sqrt(fan_in)
    for _ in range(4):  # 3 block layers + shortcut
        key, kw, kb = jax.random.split(key, 3)
        w = jax.random.uniform(kw, (input_dim, input_dim), jnp.float32,
                               minval=-bound_w, maxval=bound_w)
        b = jax.random.uniform(kb, (1, input_dim), jnp.float32,
                               minval=-bound_b, maxval=bound_b)
        params.extend([w, b])
    return tuple(params)


def ff_reference(x, params, *, cast_bf16):
    """Pure-JAX reference.  cast_bf16=True mirrors the kernel's bf16 matmul path."""
    w1, b1, w2, b2, w3, b3, ws, bs = params
    if cast_bf16:
        x_m = x.astype(jnp.bfloat16)
        w1, w2, w3, ws = (w.astype(jnp.bfloat16) for w in (w1, w2, w3, ws))
    else:
        x_m = x

    def dot(a, b):
        return jnp.dot(a.astype(b.dtype), b, preferred_element_type=jnp.float32)

    h = _leaky_relu(dot(x_m, w1) + b1)
    h = _leaky_relu(dot(h, w2) + b2)
    h = _leaky_relu(dot(h, w3) + b3)
    return h + (dot(x_m, ws) + bs)


if __name__ == "__main__":
    # Small shapes consistent with the module.  D=32 exercises the lane-pad-to-128 path;
    # batch_tile=16 with batch=32 gives grid=(2,), exercising the streamed/tiled path.
    input_dim = 32
    batch = 32

    key = jax.random.PRNGKey(0)
    key, kx = jax.random.split(key)
    x = jax.random.normal(kx, (batch, input_dim), jnp.float32)
    params = init_ff_params(key, input_dim)

    prepared = prepare_ff_params(params)           # one-time: bf16 cast + lane pad
    out = ff_forward(x, prepared, batch_tile=16)   # bf16 output by default
    out = jax.block_until_ready(out)

    ref_bf16 = ff_reference(x, params, cast_bf16=True)   # same numeric path as kernel
    ref_f32 = ff_reference(x, params, cast_bf16=False)   # module semantics in f32

    assert out.shape == (batch, input_dim)
    out_f32 = out.astype(jnp.float32)
    assert jnp.allclose(out_f32, ref_bf16, atol=2e-2, rtol=2e-2), \
        "mismatch vs bf16-path reference"
    # Documented precision tradeoff: bf16 matmul operands + bf16 output vs f32 module.
    assert jnp.allclose(out_f32, ref_f32, atol=1e-1, rtol=1e-1), \
        "mismatch vs f32 reference"

    print("KERNEL_OK")
</pallas_src>

<mosaic_0001>
module attributes {stable_mosaic.version = 11 : i64} {
  func.func @ff_kernel(%arg0: i32, %arg1: memref<16x128xf32, #tpu.memory_space<vmem>>, %arg2: memref<128x128xbf16, #tpu.memory_space<vmem>>, %arg3: memref<1x128xf32, #tpu.memory_space<vmem>>, %arg4: memref<128x128xbf16, #tpu.memory_space<vmem>>, %arg5: memref<1x128xf32, #tpu.memory_space<vmem>>, %arg6: memref<128x128xbf16, #tpu.memory_space<vmem>>, %arg7: memref<1x128xf32, #tpu.memory_space<vmem>>, %arg8: memref<128x128xbf16, #tpu.memory_space<vmem>>, %arg9: memref<1x128xf32, #tpu.memory_space<vmem>>, %arg10: memref<16x128xbf16, #tpu.memory_space<vmem>>) attributes {dimension_semantics = [#tpu.dimension_semantics<parallel>], iteration_bounds = array<i64: 2>, scalar_prefetch = 0 : i64, scratch_operands = 0 : i64, tpu.core_type = #tpu.core_type<tc>, window_params = [{transform_indices = @transform_0, window_bounds = array<i64: 16, 128>}, {pipeline_mode = #tpu.pipeline_mode<synchronous>, transform_indices = @transform_1, window_bounds = array<i64: 128, 128>}, {pipeline_mode = #tpu.pipeline_mode<synchronous>, transform_indices = @transform_2, window_bounds = array<i64: 1, 128>}, {pipeline_mode = #tpu.pipeline_mode<synchronous>, transform_indices = @transform_3, window_bounds = array<i64: 128, 128>}, {pipeline_mode = #tpu.pipeline_mode<synchronous>, transform_indices = @transform_4, window_bounds = array<i64: 1, 128>}, {pipeline_mode = #tpu.pipeline_mode<synchronous>, transform_indices = @transform_5, window_bounds = array<i64: 128, 128>}, {pipeline_mode = #tpu.pipeline_mode<synchronous>, transform_indices = @transform_6, window_bounds = array<i64: 1, 128>}, {pipeline_mode = #tpu.pipeline_mode<synchronous>, transform_indices = @transform_7, window_bounds = array<i64: 128, 128>}, {pipeline_mode = #tpu.pipeline_mode<synchronous>, transform_indices = @transform_8, window_bounds = array<i64: 1, 128>}, {transform_indices = @transform_9, window_bounds = array<i64: 16, 128>}]} {
    %c0 = arith.constant 0 : index
    %c0_0 = arith.constant 0 : index
    %0 = vector.load %arg1[%c0, %c0_0] : memref<16x128xf32, #tpu.memory_space<vmem>>, vector<16x128xf32>
    %1 = arith.truncf %0 : vector<16x128xf32> to vector<16x128xbf16>
    %c0_1 = arith.constant 0 : index
    %c0_2 = arith.constant 0 : index
    %2 = vector.load %arg2[%c0_1, %c0_2] : memref<128x128xbf16, #tpu.memory_space<vmem>>, vector<128x128xbf16>
    %cst = arith.constant dense<0.000000e+00> : vector<16x128xf32>
    %3 = tpu.matmul %1, %2, %cst {dimension_numbers = #tpu.dot_dimension_numbers<[1], [0], [0], [1], [0, 0, 1, 1], [], []>} : vector<16x128xbf16>, vector<128x128xbf16>, vector<16x128xf32> -> vector<16x128xf32>
    %c0_3 = arith.constant 0 : index
    %c0_4 = arith.constant 0 : index
    %4 = vector.load %arg3[%c0_3, %c0_4] : memref<1x128xf32, #tpu.memory_space<vmem>>, vector<1x128xf32>
    %5 = vector.broadcast %4 : vector<1x128xf32> to vector<16x128xf32>
    %6 = arith.addf %3, %5 : vector<16x128xf32>
    %cst_5 = arith.constant 0.000000e+00 : f32
    %7 = vector.broadcast %cst_5 : f32 to vector<16x128xf32>
    %8 = arith.cmpf ogt, %6, %7 : vector<16x128xf32>
    %cst_6 = arith.constant 0.00999999977 : f32
    %9 = vector.broadcast %cst_6 : f32 to vector<16x128xf32>
    %10 = arith.mulf %9, %6 : vector<16x128xf32>
    %11 = arith.select %8, %6, %10 : vector<16x128xi1>, vector<16x128xf32>
    %12 = arith.truncf %11 : vector<16x128xf32> to vector<16x128xbf16>
    %c0_7 = arith.constant 0 : index
    %c0_8 = arith.constant 0 : index
    %13 = vector.load %arg4[%c0_7, %c0_8] : memref<128x128xbf16, #tpu.memory_space<vmem>>, vector<128x128xbf16>
    %cst_9 = arith.constant dense<0.000000e+00> : vector<16x128xf32>
    %14 = tpu.matmul %12, %13, %cst_9 {dimension_numbers = #tpu.dot_dimension_numbers<[1], [0], [0], [1], [0, 0, 1, 1], [], []>} : vector<16x128xbf16>, vector<128x128xbf16>, vector<16x128xf32> -> vector<16x128xf32>
    %c0_10 = arith.constant 0 : index
    %c0_11 = arith.constant 0 : index
    %15 = vector.load %arg5[%c0_10, %c0_11] : memref<1x128xf32, #tpu.memory_space<vmem>>, vector<1x128xf32>
    %16 = vector.broadcast %15 : vector<1x128xf32> to vector<16x128xf32>
    %17 = arith.addf %14, %16 : vector<16x128xf32>
    %cst_12 = arith.constant 0.000000e+00 : f32
    %18 = vector.broadcast %cst_12 : f32 to vector<16x128xf32>
    %19 = arith.cmpf ogt, %17, %18 : vector<16x128xf32>
    %cst_13 = arith.constant 0.00999999977 : f32
    %20 = vector.broadcast %cst_13 : f32 to vector<16x128xf32>
    %21 = arith.mulf %20, %17 : vector<16x128xf32>
    %22 = arith.select %19, %17, %21 : vector<16x128xi1>, vector<16x128xf32>
    %23 = arith.truncf %22 : vector<16x128xf32> to vector<16x128xbf16>
    %c0_14 = arith.constant 0 : index
    %c0_15 = arith.constant 0 : index
    %24 = vector.load %arg6[%c0_14, %c0_15] : memref<128x128xbf16, #tpu.memory_space<vmem>>, vector<128x128xbf16>
    %cst_16 = arith.constant dense<0.000000e+00> : vector<16x128xf32>
    %25 = tpu.matmul %23, %24, %cst_16 {dimension_numbers = #tpu.dot_dimension_numbers<[1], [0], [0], [1], [0, 0, 1, 1], [], []>} : vector<16x128xbf16>, vector<128x128xbf16>, vector<16x128xf32> -> vector<16x128xf32>
    %c0_17 = arith.constant 0 : index
    %c0_18 = arith.constant 0 : index
    %26 = vector.load %arg7[%c0_17, %c0_18] : memref<1x128xf32, #tpu.memory_space<vmem>>, vector<1x128xf32>
    %27 = vector.broadcast %26 : vector<1x128xf32> to vector<16x128xf32>
    %28 = arith.addf %25, %27 : vector<16x128xf32>
    %cst_19 = arith.constant 0.000000e+00 : f32
    %29 = vector.broadcast %cst_19 : f32 to vector<16x128xf32>
    %30 = arith.cmpf ogt, %28, %29 : vector<16x128xf32>
    %cst_20 = arith.constant 0.00999999977 : f32
    %31 = vector.broadcast %cst_20 : f32 to vector<16x128xf32>
    %32 = arith.mulf %31, %28 : vector<16x128xf32>
    %33 = arith.select %30, %28, %32 : vector<16x128xi1>, vector<16x128xf32>
    %c0_21 = arith.constant 0 : index
    %c0_22 = arith.constant 0 : index
    %34 = vector.load %arg8[%c0_21, %c0_22] : memref<128x128xbf16, #tpu.memory_space<vmem>>, vector<128x128xbf16>
    %cst_23 = arith.constant dense<0.000000e+00> : vector<16x128xf32>
    %35 = tpu.matmul %1, %34, %cst_23 {dimension_numbers = #tpu.dot_dimension_numbers<[1], [0], [0], [1], [0, 0, 1, 1], [], []>} : vector<16x128xbf16>, vector<128x128xbf16>, vector<16x128xf32> -> vector<16x128xf32>
    %c0_24 = arith.constant 0 : index
    %c0_25 = arith.constant 0 : index
    %36 = vector.load %arg9[%c0_24, %c0_25] : memref<1x128xf32, #tpu.memory_space<vmem>>, vector<1x128xf32>
    %37 = vector.broadcast %36 : vector<1x128xf32> to vector<16x128xf32>
    %38 = arith.addf %35, %37 : vector<16x128xf32>
    %39 = arith.addf %33, %38 : vector<16x128xf32>
    %40 = arith.truncf %39 : vector<16x128xf32> to vector<16x128xbf16>
    %c0_26 = arith.constant 0 : index
    %c0_27 = arith.constant 0 : index
    %41 = vector.load %arg10[%c0_26, %c0_27] : memref<16x128xbf16, #tpu.memory_space<vmem>>, vector<16x128xbf16>
    tpu.vector_store %arg10[%c0_26, %c0_27], %40 {strides = array<i32>} : memref<16x128xbf16, #tpu.memory_space<vmem>>, vector<16x128xbf16>,
    return
  }
  func.func @transform_0(%arg0: i32) -> (i32, i32) {
    %c0_i32 = arith.constant 0 : i32
    %c0_i32_0 = arith.constant 0 : i32
    return %arg0, %c0_i32 : i32, i32
  }
  func.func @transform_1(%arg0: i32) -> (i32, i32) {
    %c0_i32 = arith.constant 0 : i32
    %c0_i32_0 = arith.constant 0 : i32
    %c0_i32_1 = arith.constant 0 : i32
    return %c0_i32, %c0_i32_0 : i32, i32
  }
  func.func @transform_2(%arg0: i32) -> (i32, i32) {
    %c0_i32 = arith.constant 0 : i32
    %c0_i32_0 = arith.constant 0 : i32
    %c0_i32_1 = arith.constant 0 : i32
    return %c0_i32, %c0_i32_0 : i32, i32
  }
  func.func @transform_3(%arg0: i32) -> (i32, i32) {
    %c0_i32 = arith.constant 0 : i32
    %c0_i32_0 = arith.constant 0 : i32
    %c0_i32_1 = arith.constant 0 : i32
    return %c0_i32, %c0_i32_0 : i32, i32
  }
  func.func @transform_4(%arg0: i32) -> (i32, i32) {
    %c0_i32 = arith.constant 0 : i32
    %c0_i32_0 = arith.constant 0 : i32
    %c0_i32_1 = arith.constant 0 : i32
    return %c0_i32, %c0_i32_0 : i32, i32
  }
  func.func @transform_5(%arg0: i32) -> (i32, i32) {
    %c0_i32 = arith.constant 0 : i32
    %c0_i32_0 = arith.constant 0 : i32
    %c0_i32_1 = arith.constant 0 : i32
    return %c0_i32, %c0_i32_0 : i32, i32
  }
  func.func @transform_6(%arg0: i32) -> (i32, i32) {
    %c0_i32 = arith.constant 0 : i32
    %c0_i32_0 = arith.constant 0 : i32
    %c0_i32_1 = arith.constant 0 : i32
    return %c0_i32, %c0_i32_0 : i32, i32
  }
  func.func @transform_7(%arg0: i32) -> (i32, i32) {
    %c0_i32 = arith.constant 0 : i32
    %c0_i32_0 = arith.constant 0 : i32
    %c0_i32_1 = arith.constant 0 : i32
    return %c0_i32, %c0_i32_0 : i32, i32
  }
  func.func @transform_8(%arg0: i32) -> (i32, i32) {
    %c0_i32 = arith.constant 0 : i32
    %c0_i32_0 = arith.constant 0 : i32
    %c0_i32_1 = arith.constant 0 : i32
    return %c0_i32, %c0_i32_0 : i32, i32
  }
  func.func @transform_9(%arg0: i32) -> (i32, i32) {
    %c0_i32 = arith.constant 0 : i32
    %c0_i32_0 = arith.constant 0 : i32
    return %arg0, %c0_i32 : i32, i32
  }
}

module attributes {stable_mosaic.version = 11 : i64} {
  func.func @ff_kernel(%arg0: i32, %arg1: memref<16x128xf32, #tpu.memory_space<vmem>>, %arg2: memref<128x128xbf16, #tpu.memory_space<vmem>>, %arg3: memref<1x128xf32, #tpu.memory_space<vmem>>, %arg4: memref<128x128xbf16, #tpu.memory_space<vmem>>, %arg5: memref<1x128xf32, #tpu.memory_space<vmem>>, %arg6: memref<128x128xbf16, #tpu.memory_space<vmem>>, %arg7: memref<1x128xf32, #tpu.memory_space<vmem>>, %arg8: memref<128x128xbf16, #tpu.memory_space<vmem>>, %arg9: memref<1x128xf32, #tpu.memory_space<vmem>>, %arg10: memref<16x128xbf16, #tpu.memory_space<vmem>>) attributes {dimension_semantics = [#tpu.dimension_semantics<parallel>], iteration_bounds = array<i64: 2>, scalar_prefetch = 0 : i64, scratch_operands = 0 : i64, tpu.core_type = #tpu.core_type<tc>, window_params = [{transform_indices = @transform_0, window_bounds = array<i64: 16, 128>}, {pipeline_mode = #tpu.pipeline_mode<synchronous>, transform_indices = @transform_1, window_bounds = array<i64: 128, 128>}, {pipeline_mode = #tpu.pipeline_mode<synchronous>, transform_indices = @transform_2, window_bounds = array<i64: 1, 128>}, {pipeline_mode = #tpu.pipeline_mode<synchronous>, transform_indices = @transform_3, window_bounds = array<i64: 128, 128>}, {pipeline_mode = #tpu.pipeline_mode<synchronous>, transform_indices = @transform_4, window_bounds = array<i64: 1, 128>}, {pipeline_mode = #tpu.pipeline_mode<synchronous>, transform_indices = @transform_5, window_bounds = array<i64: 128, 128>}, {pipeline_mode = #tpu.pipeline_mode<synchronous>, transform_indices = @transform_6, window_bounds = array<i64: 1, 128>}, {pipeline_mode = #tpu.pipeline_mode<synchronous>, transform_indices = @transform_7, window_bounds = array<i64: 128, 128>}, {pipeline_mode = #tpu.pipeline_mode<synchronous>, transform_indices = @transform_8, window_bounds = array<i64: 1, 128>}, {transform_indices = @transform_9, window_bounds = array<i64: 16, 128>}]} {
    %c0 = arith.constant 0 : index
    %c0_0 = arith.constant 0 : index
    %0 = vector.load %arg1[%c0, %c0_0] : memref<16x128xf32, #tpu.memory_space<vmem>>, vector<16x128xf32>
    %1 = arith.truncf %0 : vector<16x128xf32> to vector<16x128xbf16>
    %c0_1 = arith.constant 0 : index
    %c0_2 = arith.constant 0 : index
    %2 = vector.load %arg2[%c0_1, %c0_2] : memref<128x128xbf16, #tpu.memory_space<vmem>>, vector<128x128xbf16>
    %cst = arith.constant dense<0.000000e+00> : vector<16x128xf32>
    %3 = tpu.matmul %1, %2, %cst {dimension_numbers = #tpu.dot_dimension_numbers<[1], [0], [0], [1], [0, 0, 1, 1], [], []>} : vector<16x128xbf16>, vector<128x128xbf16>, vector<16x128xf32> -> vector<16x128xf32>
    %c0_3 = arith.constant 0 : index
    %c0_4 = arith.constant 0 : index
    %4 = vector.load %arg3[%c0_3, %c0_4] : memref<1x128xf32, #tpu.memory_space<vmem>>, vector<1x128xf32>
    %5 = vector.broadcast %4 : vector<1x128xf32> to vector<16x128xf32>
    %6 = arith.addf %3, %5 : vector<16x128xf32>
    %cst_5 = arith.constant 0.000000e+00 : f32
    %7 = vector.broadcast %cst_5 : f32 to vector<16x128xf32>
    %8 = arith.cmpf ogt, %6, %7 : vector<16x128xf32>
    %cst_6 = arith.constant 0.00999999977 : f32
    %9 = vector.broadcast %cst_6 : f32 to vector<16x128xf32>
    %10 = arith.mulf %9, %6 : vector<16x128xf32>
    %11 = arith.select %8, %6, %10 : vector<16x128xi1>, vector<16x128xf32>
    %12 = arith.truncf %11 : vector<16x128xf32> to vector<16x128xbf16>
    %c0_7 = arith.constant 0 : index
    %c0_8 = arith.constant 0 : index
    %13 = vector.load %arg4[%c0_7, %c0_8] : memref<128x128xbf16, #tpu.memory_space<vmem>>, vector<128x128xbf16>
    %cst_9 = arith.constant dense<0.000000e+00> : vector<16x128xf32>
    %14 = tpu.matmul %12, %13, %cst_9 {dimension_numbers = #tpu.dot_dimension_numbers<[1], [0], [0], [1], [0, 0, 1, 1], [], []>} : vector<16x128xbf16>, vector<128x128xbf16>, vector<16x128xf32> -> vector<16x128xf32>
    %c0_10 = arith.constant 0 : index
    %c0_11 = arith.constant 0 : index
    %15 = vector.load %arg5[%c0_10, %c0_11] : memref<1x128xf32, #tpu.memory_space<vmem>>, vector<1x128xf32>
    %16 = vector.broadcast %15 : vector<1x128xf32> to vector<16x128xf32>
    %17 = arith.addf %14, %16 : vector<16x128xf32>
    %cst_12 = arith.constant 0.000000e+00 : f32
    %18 = vector.broadcast %cst_12 : f32 to vector<16x128xf32>
    %19 = arith.cmpf ogt, %17, %18 : vector<16x128xf32>
    %cst_13 = arith.constant 0.00999999977 : f32
    %20 = vector.broadcast %cst_13 : f32 to vector<16x128xf32>
    %21 = arith.mulf %20, %17 : vector<16x128xf32>
    %22 = arith.select %19, %17, %21 : vector<16x128xi1>, vector<16x128xf32>
    %23 = arith.truncf %22 : vector<16x128xf32> to vector<16x128xbf16>
    %c0_14 = arith.constant 0 : index
    %c0_15 = arith.constant 0 : index
    %24 = vector.load %arg6[%c0_14, %c0_15] : memref<128x128xbf16, #tpu.memory_space<vmem>>, vector<128x128xbf16>
    %cst_16 = arith.constant dense<0.000000e+00> : vector<16x128xf32>
    %25 = tpu.matmul %23, %24, %cst_16 {dimension_numbers = #tpu.dot_dimension_numbers<[1], [0], [0], [1], [0, 0, 1, 1], [], []>} : vector<16x128xbf16>, vector<128x128xbf16>, vector<16x128xf32> -> vector<16x128xf32>
    %c0_17 = arith.constant 0 : index
    %c0_18 = arith.constant 0 : index
    %26 = vector.load %arg7[%c0_17, %c0_18] : memref<1x128xf32, #tpu.memory_space<vmem>>, vector<1x128xf32>
    %27 = vector.broadcast %26 : vector<1x128xf32> to vector<16x128xf32>
    %28 = arith.addf %25, %27 : vector<16x128xf32>
    %cst_19 = arith.constant 0.000000e+00 : f32
    %29 = vector.broadcast %cst_19 : f32 to vector<16x128xf32>
    %30 = arith.cmpf ogt, %28, %29 : vector<16x128xf32>
    %cst_20 = arith.constant 0.00999999977 : f32
    %31 = vector.broadcast %cst_20 : f32 to vector<16x128xf32>
    %32 = arith.mulf %31, %28 : vector<16x128xf32>
    %33 = arith.select %30, %28, %32 : vector<16x128xi1>, vector<16x128xf32>
    %c0_21 = arith.constant 0 : index
    %c0_22 = arith.constant 0 : index
    %34 = vector.load %arg8[%c0_21, %c0_22] : memref<128x128xbf16, #tpu.memory_space<vmem>>, vector<128x128xbf16>
    %cst_23 = arith.constant dense<0.000000e+00> : vector<16x128xf32>
    %35 = tpu.matmul %1, %34, %cst_23 {dimension_numbers = #tpu.dot_dimension_numbers<[1], [0], [0], [1], [0, 0, 1, 1], [], []>} : vector<16x128xbf16>, vector<128x128xbf16>, vector<16x128xf32> -> vector<16x128xf32>
    %c0_24 = arith.constant 0 : index
    %c0_25 = arith.constant 0 : index
    %36 = vector.load %arg9[%c0_24, %c0_25] : memref<1x128xf32, #tpu.memory_space<vmem>>, vector<1x128xf32>
    %37 = vector.broadcast %36 : vector<1x128xf32> to vector<16x128xf32>
    %38 = arith.addf %35, %37 : vector<16x128xf32>
    %39 = arith.addf %33, %38 : vector<16x128xf32>
    %40 = arith.truncf %39 : vector<16x128xf32> to vector<16x128xbf16>
    %c0_26 = arith.constant 0 : index
    %c0_27 = arith.constant 0 : index
    %41 = vector.load %arg10[%c0_26, %c0_27] : memref<16x128xbf16, #tpu.memory_space<vmem>>, vector<16x128xbf16>
    tpu.vector_store %arg10[%c0_26, %c0_27], %40 {strides = array<i32>} : memref<16x128xbf16, #tpu.memory_space<vmem>>, vector<16x128xbf16>,
    return
  }
  func.func @transform_0(%arg0: i32) -> (i32, i32) {
    %c0_i32 = arith.constant 0 : i32
    %c0_i32_0 = arith.constant 0 : i32
    return %arg0, %c0_i32 : i32, i32
  }
  func.func @transform_1(%arg0: i32) -> (i32, i32) {
    %c0_i32 = arith.constant 0 : i32
    %c0_i32_0 = arith.constant 0 : i32
    %c0_i32_1 = arith.constant 0 : i32
    return %c0_i32, %c0_i32_0 : i32, i32
  }
  func.func @transform_2(%arg0: i32) -> (i32, i32) {
    %c0_i32 = arith.constant 0 : i32
    %c0_i32_0 = arith.constant 0 : i32
    %c0_i32_1 = arith.constant 0 : i32
    return %c0_i32, %c0_i32_0 : i32, i32
  }
  func.func @transform_3(%arg0: i32) -> (i32, i32) {
    %c0_i32 = arith.constant 0 : i32
    %c0_i32_0 = arith.constant 0 : i32
    %c0_i32_1 = arith.constant 0 : i32
    return %c0_i32, %c0_i32_0 : i32, i32
  }
  func.func @transform_4(%arg0: i32) -> (i32, i32) {
    %c0_i32 = arith.constant 0 : i32
    %c0_i32_0 = arith.constant 0 : i32
    %c0_i32_1 = arith.constant 0 : i32
    return %c0_i32, %c0_i32_0 : i32, i32
  }
  func.func @transform_5(%arg0: i32) -> (i32, i32) {
    %c0_i32 = arith.constant 0 : i32
    %c0_i32_0 = arith.constant 0 : i32
    %c0_i32_1 = arith.constant 0 : i32
    return %c0_i32, %c0_i32_0 : i32, i32
  }
  func.func @transform_6(%arg0: i32) -> (i32, i32) {
    %c0_i32 = arith.constant 0 : i32
    %c0_i32_0 = arith.constant 0 : i32
    %c0_i32_1 = arith.constant 0 : i32
    return %c0_i32, %c0_i32_0 : i32, i32
  }
  func.func @transform_7(%arg0: i32) -> (i32, i32) {
    %c0_i32 = arith.constant 0 : i32
    %c0_i32_0 = arith.constant 0 : i32
    %c0_i32_1 = arith.constant 0 : i32
    return %c0_i32, %c0_i32_0 : i32, i32
  }
  func.func @transform_8(%arg0: i32) -> (i32, i32) {
    %c0_i32 = arith.constant 0 : i32
    %c0_i32_0 = arith.constant 0 : i32
    %c0_i32_1 = arith.constant 0 : i32
    return %c0_i32, %c0_i32_0 : i32, i32
  }
  func.func @transform_9(%arg0: i32) -> (i32, i32) {
    %c0_i32 = arith.constant 0 : i32
    %c0_i32_0 = arith.constant 0 : i32
    return %arg0, %c0_i32 : i32, i32
  }
}

</mosaic_0001>

<bundles_post_ra>
// kernel: tpu_custom_call.1
= control target key start
LH: loop header
LB: loop body
LE: loop exit
PB: predicated region body
PF: predicated region fallthrough
CT: control target
= control target key end

     0   :  { %s1657_s0 = inlined_call_operand.hbm [shape: f32[32,128], index: 0, kind: input, shape index: {}]   ;;  %s1658_s1 = inlined_call_operand.hbm [shape: bf16[128,128], index: 1, kind: input, shape index: {}]   ;;  %s1659_s2 = inlined_call_operand.vmem [shape: f32[1,128], index: 2, kind: input, shape index: {}]   ;;  %s1660_s3 = inlined_call_operand.hbm [shape: bf16[128,128], index: 3, kind: input, shape index: {}]   ;;  %s1661_s4 = inlined_call_operand.vmem [shape: f32[1,128], index: 4, kind: input, shape index: {}]   ;;  %s1662_s5 = inlined_call_operand.hbm [shape: bf16[128,128], index: 5, kind: input, shape index: {}]   ;;  %s1663_s6 = inlined_call_operand.vmem [shape: f32[1,128], index: 6, kind: input, shape index: {}]   ;;  %s1664_s7 = inlined_call_operand.hbm [shape: bf16[128,128], index: 7, kind: input, shape index: {}]   ;;  %s1665_s8 = inlined_call_operand.vmem [shape: f32[1,128], index: 8, kind: input, shape index: {}]   ;;  %s1666_s9 = inlined_call_operand.hbm [shape: bf16[32,128], index: 9, kind: output, shape index: {}]  }
   0x1   :  { %1667 = sst [smem:[#allocation16_spill]] %s1658_s1 }
   0x2   :  { %1668 = sst [smem:[#allocation17_spill]] %s1660_s3 }
   0x3   :  { %1669 = sst [smem:[#allocation18_spill]] %s1662_s5 }
   0x4   :  { %14 = vsyncpa [#allocation3], 0 }
   0x5   :  { %16 = vsyncpa [#allocation3 + $0x1], 0 }
   0x6   :  { %17 = vsyncpa [#allocation6], 0 }
   0x7   :  { %18 = vsyncpa [#allocation9], 0 }
   0x8   :  { %19 = vsyncpa [#allocation4], 0 }
   0x9   :  { %21 = vsyncpa [#allocation4 + $0x1], 0  ;;  %s1477_s30 = smov 0   ;;  %s1479_s10 = smov 0  }
   0xa   :  { %s1481_s11 = smov 0   ;;  %s1483_s12 = smov 0  }
   0xb LB: > { %s1498_s13 = sadd.s32 4294967295, %s1415_s12   ;;  %s905_s14 = sadd.s32 4294967294, %s1415_s12   ;;  %s1415_s12 = sphi %s1483_s12, %s1683_s12   ;;  %s1411_s11 = sphi %s1481_s11, %s1682_s11   ;;  %s1407_s10 = sphi %s1479_s10, %s1681_s10   ;;  %s1403_s30 = sphi %s1477_s30, %s1680_s30  }
   0xc   : > { %p47_p0 = scmp.ne.s32.totalorder %s1407_s10, %s1403_s30  ;;  %p48_p1 = scmp.eq.s32.totalorder %s1498_s13, 0 }
   0xd   : > { %p239_p2 = scmp.eq.s32.totalorder %s1498_s13, 1  ;;  %p245_p3 = scmp.eq.s32.totalorder %s905_s14, 1 }
   0xe   : > { %p1507_p4 = por %p48_p1, %p47_p0  ;;  %p906_p5 = scmp.ge.s32.totalorder %s1415_s12, 1 }
   0xf   : > { %p1512_p6 = por %p245_p3, %p47_p0  ;;  %p252_p7 = scmp.lt.s32.totalorder %s1415_s12, 3 }
  0x10   : > { %s1672_s1 = sld [smem:[#allocation16_spill]]  ;;  %s1417_s21 = smov [#allocation5]  }
  0x11   : > { %p1520_p8 = pnand %p906_p5, %p252_p7  ;;  %s265_s22 = sshll.u32 %s1417_s21, 4  ;;  %s266_s22 = int_to_ptr.vmem [resolvable:$true] %s265_s22 }
  0x12   : > { %s1675_s5 = sld [smem:[#allocation18_spill]]  ;;  %s1418_s27 = smov 64  }
  0x13   : > { %p1114_p9 = pneg %p1520_p8  ;;  %s1419_s28 = smov 4  }
  0x14   : > { %s1420_s29 = smov [#allocation8]   ;;  %s1676_s3 = sld [smem:[#allocation17_spill]] }
  0x15   : > { %p1528_p10 = pnand %p1114_p9, %p48_p1  ;;  %s299_s14 = sshll.u32 %s1420_s29, 4  ;;  %s300_s14 = int_to_ptr.vmem [resolvable:$true] %s299_s14 }
  0x16   : > { %s263_s19 = sshll.u32 %s1672_s1, 4  ;;  %s1422_s17 = smov [#allocation10]   ;;  %s264_s19 = int_to_ptr.hbm [resolvable:$true] %s263_s19 }
  0x17   : > { %1117 = dma.hbm_to_vmem [thread:$0]  (!%p1528_p10), %s264_s19, 1024, %s266_s22, [#allocation6], %s1418_s27, %s1418_s27, %s1419_s28  }
  0x18   : > { %s297_s26 = sshll.u32 %s1675_s5, 4  ;;  %s314_s19 = sshll.u32 %s1664_s7, 4  ;;  %s298_s26 = int_to_ptr.hbm [resolvable:$true] %s297_s26  ;;  %s315_s19 = int_to_ptr.hbm [resolvable:$true] %s314_s19 }
  0x19   : > { %1123 = dma.hbm_to_vmem [thread:$0]  (!%p1528_p10), %s298_s26, 1024, %s300_s14, [#allocation9], %s1418_s27, %s1418_s27, %s1419_s28  }
  0x1a   : > { %s280_s21 = sshll.u32 %s1676_s3, 4  ;;  %s1421_s22 = smov [#allocation7]   ;;  %s281_s21 = int_to_ptr.hbm [resolvable:$true] %s280_s21 }
  0x1b   : > { %s282_s29 = sshll.u32 %s1421_s22, 4  ;;  %s316_s18 = sshll.u32 %s1422_s17, 4  ;;  %s283_s29 = int_to_ptr.vmem [resolvable:$true] %s282_s29  ;;  %s317_s18 = int_to_ptr.vmem [resolvable:$true] %s316_s18 }
  0x1c   : > { %1120 = dma.hbm_to_vmem [thread:$0]  (!%p1528_p10), %s281_s21, 1024, %s283_s29, [#allocation6], %s1418_s27, %s1418_s27, %s1419_s28  }
  0x1d   : > { %1126 = dma.hbm_to_vmem [thread:$0]  (!%p1528_p10), %s315_s19, 1024, %s317_s18, [#allocation9], %s1418_s27, %s1418_s27, %s1419_s28  }
  0x1e   : > { %s1551_s26 = sadd.s32 1, %s1415_s12   ;;  %s34_s14 = sadd.s32 1, %s1411_s11 }
  0x1f   : > { %s31_s24 = ssub.s32 %s1415_s12, %s1551_s26  ;;  %p41_p12 = scmp.ne.s32.totalorder %s1411_s11, %s1407_s10 }
  0x20   : > { %p32_p13 = scmp.eq.s32.totalorder %s31_s24, 0  ;;  %p42_p0 = scmp.eq.s32.totalorder %s1415_s12, 0 }
  0x21   : > { %p1561_p3 = por %p239_p2, %p41_p12  ;;  %p1139_p5 = scmp.lt.s32.totalorder %s1415_s12, 2 }
  0x22   : > { %s1567_s21 = scalar_select %p32_p13, %s1411_s11, %s34_s14  }
  0x23   : > { %p43_p7 = por %p42_p0, %p41_p12  ;;  %s333_s22 = sand.u32 1, %s1411_s11  }
  0x24   : > { %s912_s23 = sshll.u32 %s333_s22, 4  ;;  %s1055_s27 = sshll.u32 %s1415_s12, 4 }
  0x25   : > { %s342_s29 = scalar_lea.hbm %s1657_s0, %s1055_s27  ;;  %s337_s17 = scalar_lea.vmem [#allocation2], %s912_s23 }
  0x26   : > { %s345_s18 = sshll.u32 %s337_s17, 4  ;;  %s343_s24 = sshll.u32 %s342_s29, 4  ;;  %s346_s18 = int_to_ptr.vmem [resolvable:$true] %s345_s18  ;;  %s344_s24 = int_to_ptr.hbm [resolvable:$true] %s343_s24 }
  0x27   : > { %p1574_p2 = pnand %p1139_p5, %p43_p7  ;;  %s334_s14 = scalar_lea.sflag [#allocation3], %s333_s22 }
  0x28   : > { %s1311_s3 = sshra.s32 %s344_s24, 4  ;;  %s1318_s28 = scalar_lea.hbm %s1657_s0, 32  ;;  %s1312_s3 = int_to_ptr.hbm [resolvable:$true] %s1311_s3 }
  0x29   : > { %s1313_s5 = scalar_lea.hbm %s1312_s3, 16  ;;  %p1315_p10 = pneg %p1574_p2 }
  0x2a   : > { %p1314_p9 = scmp.ne.s32.totalorder %s1312_s3, %s1313_s5  ;;  %p1319_p0 = scmp.lt.s32.totalorder %s1312_s3, %s1657_s0 }
  0x2b   : > { %p1320_p5 = scmp.lt.s32.totalorder %s1318_s28, %s1313_s5 }
  0x2c   : > { %p1316_p12 = pnand %p1315_p10, %p1314_p9 }
  0x2d   : > { %p1321_p7 = por %p1320_p5, %p1319_p0 }
  0x2e   : > { %p1317_p13 = pneg %p1316_p12 }
  0x30   : > { %p1322_p11 = pnand %p1321_p7, %p1317_p13 }
  0x32   : > { %1325 = shalt.err (!%p1322_p11)
}
  0x33   : > { %s1423_s22 = smov 128   ;;  %s1424_s17 = smov 8  }
  0x34   : > { %1130 = dma.hbm_to_vmem [thread:$0]  (!%p1574_p2), %s344_s24, 256, %s346_s18, %s334_s14, %s1423_s22, %s1423_s22, %s1424_s17  }
  0x35   : > { %357 = sbr.rel (%p1520_p8) target bundleno = 530 (0x212), region = 56  ;;  %s1591_s27 = sand.u32 (!%p1520_p8), 1, %s1407_s10  }
  0x36   : > { %s916_s23 = sshll.u32 (!%p1520_p8), %s1591_s27, 4  ;;  %s360_s3 = scalar_lea.sflag (!%p1520_p8), [#allocation3], %s1591_s27 }
  0x37   : > { %s1595_s5 = scalar_lea.vmem (!%p1520_p8), [#allocation2], %s916_s23 }
  0x3a   : > { %1386 = dma.done.wait (%p1507_p4), %s360_s3, 256  }
  0x3b   : > { %1388 = vsyncadd (%p1507_p4), %s360_s3, 4294967040 }
  0x3c   : > { %1390 = dma.done.wait (%p48_p1), [#allocation6], 2048  }
  0x3d   : > { %1392 = vsyncadd (%p48_p1), [#allocation6], 4294965248 }
  0x3e   : > { %1394 = dma.done.wait (%p48_p1), [#allocation9], 2048  }
  0x3f   : > { %1396 = vsyncadd (%p48_p1), [#allocation9], 4294965248  ;;  %v1063_v0 = vld [vmem:[#allocation5 + $0x38] sm:$0xff]  ;;  %v1062_v1 = vld [vmem:[#allocation5 + $0x30] sm:$0xff]  ;;  %s921_s29 = sshll.u32 %s1591_s27, 3  ;;  %s1088_s22 = sshll.u32 %s1498_s13, 3 }
  0x40   : > { %492 = vmatpush.bf16.msra.mxu0 %v1063_v0  ;;  %v1071_v2 = vld [vmem:[#allocation7 + $0x38] sm:$0xff]  ;;  %v1070_v3 = vld [vmem:[#allocation7 + $0x30] sm:$0xff]  ;;  %v1061_v4 = vld [vmem:[#allocation5 + $0x28] sm:$0xff]  ;;  %s790_s3 = scalar_lea.hbm %s1666_s9, %s1088_s22  ;;  %s779_s13 = scalar_lea.sflag [#allocation4], %s1591_s27 }
  0x41   : > { %581 = vmatpush.bf16.msra.mxu1 %v1071_v2  ;;  %v1069_v5 = vld [vmem:[#allocation7 + $0x28] sm:$0xff]  ;;  %v1060_v6 = vld [vmem:[#allocation5 + $0x20] sm:$0xff]  ;;  %v1059_v8 = vld [vmem:[#allocation5 + $0x18] sm:$0xff]  ;;  %s793_s15 = sshll.u32 %s790_s3, 4  ;;  %s1361_s28 = scalar_lea.hbm %s1666_s9, 16  ;;  %s794_s15 = int_to_ptr.hbm [resolvable:$true] %s793_s15 }
  0x42   : > { %v1068_v7 = vld [vmem:[#allocation7 + $0x20] sm:$0xff]  ;;  %v1058_v9 = vld [vmem:[#allocation5 + $0x10] sm:$0xff]  ;;  %v1057_v10 = vld [vmem:[#allocation5 + $0x8] sm:$0xff]  ;;  %s1355_s20 = sshra.s32 %s794_s15, 4  ;;  %s1356_s20 = int_to_ptr.hbm [resolvable:$true] %s1355_s20 }
  0x43   : > { %v1056_v11 = vld [vmem:[#allocation5] sm:$0xff]  ;;  %v422_v13 = vld [vmem:[%s1595_s5 + $0x8] sm:$0xff]  ;;  %v1066_v16 = vld [vmem:[#allocation7 + $0x10] sm:$0xff]  ;;  %s1357_s18 = scalar_lea.hbm %s1356_s20, 8  ;;  %p1362_p11 = scmp.lt.s32.totalorder %s1356_s20, %s1666_s9 }
  0x44   : > { %493 = vmatpush.bf16.msra.mxu0 %v1062_v1  ;;  %v421_v12 = vld [vmem:[%s1595_s5] sm:$0xff]  ;;  %v1067_v15 = vld [vmem:[#allocation7 + $0x18] sm:$0xff]  ;;  %v1065_v17 = vld [vmem:[#allocation7 + $0x8] sm:$0xff]  ;;  %s418_s5 = scalar_lea.vmem [#allocation11], %s921_s29  ;;  %p1358_p1 = scmp.ne.s32.totalorder %s1356_s20, %s1357_s18 }
  0x45   : > { %582 = vmatpush.bf16.msra.mxu1 %v1070_v3  ;;  %v423_v14 = vpack.c.bf16 %v422_v13, %v421_v12  ;;  %v1064_v18 = vld [vmem:[#allocation7] sm:$0xff]  ;;  %v1087_v19 = vld [vmem:[#allocation10 + $0x38] sm:$0xff]  ;;  %v1086_v21 = vld [vmem:[#allocation10 + $0x30] sm:$0xff]  ;;  %s791_s1 = sshll.u32 %s418_s5, 4  ;;  %p1363_p2 = scmp.lt.s32.totalorder %s1361_s28, %s1357_s18  ;;  %s792_s1 = int_to_ptr.vmem [resolvable:$true] %s791_s1 }
  0x46   : > { %v1079_v20 = vld [vmem:[#allocation8 + $0x38] sm:$0xff]  ;;  %758 = vmatpush.bf16.msra.mxu3 %v1087_v19  ;;  %v1078_v22 = vld [vmem:[#allocation8 + $0x30] sm:$0xff]  ;;  %v1085_v23 = vld [vmem:[#allocation10 + $0x28] sm:$0xff]  ;;  %p1359_p4 = pnand %p1358_p1, %p1561_p3 }
  0x47   : > { %670 = vmatpush.bf16.msra.mxu2 %v1079_v20  ;;  %v1077_v24 = vld [vmem:[#allocation8 + $0x28] sm:$0xff]  ;;  %v1084_v25 = vld [vmem:[#allocation10 + $0x20] sm:$0xff]  ;;  %v1083_v27 = vld [vmem:[#allocation10 + $0x18] sm:$0xff]  ;;  %p1364_p9 = por %p1363_p2, %p1362_p11 }
  0x48   : > { %494 = vmatpush.bf16.msra.mxu0 %v1061_v4  ;;  %v1076_v26 = vld [vmem:[#allocation8 + $0x20] sm:$0xff]  ;;  %v1082_v38 = vld [vmem:[#allocation10 + $0x10] sm:$0xff]  ;;  %v1075_v39 = vld [vmem:[#allocation8 + $0x18] sm:$0xff]  ;;  %p1360_p8 = pneg %p1359_p4 }
  0x49   : > { %583 = vmatpush.bf16.msra.mxu1 %v1069_v5  ;;  %v1187_v29 = vld [vmem:[%s1659_s2] ss:$0 sm:$0xff]  ;;  %v1081_v40 = vld [vmem:[#allocation10 + $0x8] sm:$0xff]  ;;  %v1074_v41 = vld [vmem:[#allocation8 + $0x10] sm:$0xff] }
  0x4a   : > { %759 = vmatpush.bf16.msra.mxu3 %v1086_v21  ;;  %v1080_v42 = vld [vmem:[#allocation10] sm:$0xff]  ;;  %v1073_v43 = vld [vmem:[#allocation8 + $0x8] sm:$0xff]  ;;  %p1365_p10 = pnand %p1364_p9, %p1360_p8 }
  0x4b   : > { %671 = vmatpush.bf16.msra.mxu2 %v1078_v22  ;;  %v1072_v44 = vld [vmem:[#allocation8] sm:$0xff] }
  0x4c   : > { %495 = vmatpush.bf16.msra.mxu0 %v1060_v6  ;;  %v1188_v46 = vld [vmem:[%s1661_s4] ss:$0 sm:$0xff] }
  0x4d   : > { %584 = vmatpush.bf16.msra.mxu1 %v1068_v7  ;;  %v1190_v56 = vld [vmem:[%s1663_s6] ss:$0 sm:$0xff] }
  0x4e   : > { %760 = vmatpush.bf16.msra.mxu3 %v1085_v23  ;;  %v1189_v59 = vld [vmem:[%s1665_s8] ss:$0 sm:$0xff] }
  0x4f   : > { %672 = vmatpush.bf16.msra.mxu2 %v1077_v24 }
  0x50   : > { %496 = vmatpush.bf16.msra.mxu0 %v1059_v8 }
  0x51   : > { %585 = vmatpush.bf16.msra.mxu1 %v1067_v15 }
  0x52   : > { %761 = vmatpush.bf16.msra.mxu3 %v1084_v25 }
  0x53   : > { %673 = vmatpush.bf16.msra.mxu2 %v1076_v26 }
  0x54   : > { %497 = vmatpush.bf16.msra.mxu0 %v1058_v9 }
  0x55   : > { %586 = vmatpush.bf16.msra.mxu1 %v1066_v16 }
  0x56   : > { %762 = vmatpush.bf16.msra.mxu3 %v1083_v27 }
  0x57   : > { %674 = vmatpush.bf16.msra.mxu2 %v1075_v39 }
  0x58   : > { %498 = vmatpush.bf16.msra.mxu0 %v1057_v10 }
  0x59   : > { %587 = vmatpush.bf16.msra.mxu1 %v1065_v17 }
  0x5a   : > { %763 = vmatpush.bf16.msra.mxu3 %v1082_v38 }
  0x5b   : > { %675 = vmatpush.bf16.msra.mxu2 %v1074_v41 }
  0x5c   : > { %499 = vmatpush.bf16.msra.mxu0 %v1056_v11 }
  0x5d   : > { %588 = vmatpush.bf16.msra.mxu1 %v1064_v18 }
  0x5e   : > { %764 = vmatpush.bf16.msra.mxu3 %v1081_v40 }
  0x5f   : > { %500 = vmatmul.bf16.vlgmr.msra.gmra.mxu0 %v423_v14  ;;  %676 = vmatpush.bf16.msra.mxu2 %v1073_v43 }
  0x62   : > { %765 = vmatpush.bf16.msra.mxu3 %v1080_v42 }
  0x63   : > { %677 = vmatpush.bf16.msra.mxu2 %v1072_v44 }
  0x65   : > { %766 = vmatmul.bf16.vlgmr.msra.gmra.mxu3 %v423_v14 }
  0xdc   : > { %v501_v28 = vpop.f32.mrf.mxu0 }
  0xdd   : > { %v502_v30 = vadd.f32 %v1187_v29, %v501_v28 }
  0xdf   : > { %v508_v32 = vmul.f32 0.01, %v502_v30  ;;  %vm506_vm0 = vcmp.gt.f32.partialorder %v502_v30, 0.0 }
  0xe1   : > { %v510_v35 = vsel %vm506_vm0, %v502_v30, %v508_v32 }
  0xe4   : > { %v503_v31 = vpop.f32.mrf.mxu0 }
  0xe5   : > { %v504_v33 = vadd.f32 %v1187_v29, %v503_v31 }
  0xe7   : > { %v509_v34 = vmul.f32 0.01, %v504_v33  ;;  %vm507_vm1 = vcmp.gt.f32.partialorder %v504_v33, 0.0 }
  0xe8   : > { %v767_v55 = vpop.f32.mrf.mxu3 }
  0xe9   : > { %v511_v36 = vsel %vm507_vm1, %v504_v33, %v509_v34  ;;  %v768_v0 = vadd.f32 %v1189_v59, %v767_v55 }
  0xea   : > { %v512_v37 = vpack.c.bf16 %v511_v36, %v510_v35 }
  0xec   : > { %589 = vmatmul.bf16.vlgmr.msra.gmra.mxu1 %v512_v37 }
  0xf0   : > { %v769_v62 = vpop.f32.mrf.mxu3 }
  0xf1   : > { %v770_v3 = vadd.f32 %v1189_v59, %v769_v62 }
 0x169   : > { %v590_v45 = vpop.f32.mrf.mxu1 }
 0x16a   : > { %v591_v47 = vadd.f32 %v1188_v46, %v590_v45 }
 0x16c   : > { %v597_v49 = vmul.f32 0.01, %v591_v47  ;;  %vm595_vm2 = vcmp.gt.f32.partialorder %v591_v47, 0.0 }
 0x16e   : > { %v599_v52 = vsel %vm595_vm2, %v591_v47, %v597_v49 }
 0x171   : > { %v592_v48 = vpop.f32.mrf.mxu1 }
 0x172   : > { %v593_v50 = vadd.f32 %v1188_v46, %v592_v48 }
 0x174   : > { %v598_v51 = vmul.f32 0.01, %v593_v50  ;;  %vm596_vm3 = vcmp.gt.f32.partialorder %v593_v50, 0.0 }
 0x176   : > { %v600_v53 = vsel %vm596_vm3, %v593_v50, %v598_v51 }
 0x177   : > { %v601_v54 = vpack.c.bf16 %v600_v53, %v599_v52 }
 0x179   : > { %678 = vmatmul.bf16.vlgmr.msra.gmra.mxu2 %v601_v54 }
 0x1fc   : > { %v679_v57 = vpop.f32.mrf.mxu2 }
 0x1fd   : > { %v680_v58 = vadd.f32 %v1190_v56, %v679_v57 }
 0x1ff   : > { %v686_v60 = vmul.f32 0.01, %v680_v58  ;;  %vm684_vm4 = vcmp.gt.f32.partialorder %v680_v58, 0.0 }
 0x201   : > { %v688_v1 = vsel %vm684_vm4, %v680_v58, %v686_v60 }
 0x202   : > { %v772_v5 = vadd.f32 %v768_v0, %v688_v1 }
 0x204   : > { %v681_v61 = vpop.f32.mrf.mxu2 }
 0x205   : > { %v682_v63 = vadd.f32 %v1190_v56, %v681_v61 }
 0x207   : > { %vm685_vm5 = vcmp.gt.f32.partialorder %v682_v63, 0.0  ;;  %v687_v2 = vmul.f32 0.01, %v682_v63 }
 0x209   : > { %v689_v4 = vsel %vm685_vm5, %v682_v63, %v687_v2 }
 0x20a   : > { %v773_v6 = vadd.f32 %v770_v3, %v689_v4 }
 0x20c   : > { %v1092_v7 = vpack.c.bf16 %v773_v6, %v772_v5 }
 0x20e   : > { %1093 = vst [vmem:[%s418_s5] sm:$0xff] %v1092_v7  }
 0x20f   : > { %1368 = shalt.err (!%p1365_p10)
}
 0x210   : > { %s1425_s27 = smov 64   ;;  %s1426_s22 = smov 4  }
 0x211   : > { %1112 = dma.vmem_to_hbm [thread:$0]  (%p1561_p3), %s792_s1, 128, %s794_s15, %s779_s13, %s1425_s27, %s1425_s27, %s1426_s22  }
 0x212 PF: > { %s808_s17 = sand.u32 1, %s1403_s30   ;;  %p1679_p12 = scmp.ge.s32.totalorder %s1415_s12, 2 }
 0x213   : > { %s809_s23 = scalar_lea.sflag [#allocation4], %s808_s17 }
 0x214   : > { %p1132_p13 = pnand %p1679_p12, %p1512_p6 }
 0x216   : > { %p1133_p0 = pneg %p1132_p13 }
 0x218   : > { %1398 = dma.done.wait (%p1133_p0), %s809_s23, 128  }
 0x219   : > { %1400 = vsyncadd (%p1133_p0), %s809_s23, 4294967168  ;;  %p24_p5 = scmp.ge.s32.totalorder %s1551_s26, 4   ;;  %s1680_s30 = smov %s1407_s10 }
 0x21a   : > { %s1681_s10 = smov %s1411_s11  ;;  %s1682_s11 = smov %s1567_s21 }
 0x21b   : > { %s1683_s12 = smov %s1551_s26  ;;  %26 = sbr.rel (!%p24_p5) target bundleno = 11 (0xb), region = 117 }
 0x220   :  { %815 = vsyncpa [#allocation3], 1 }
 0x221   :  { %817 = vsyncpa [#allocation3 + $0x1], 1 }
 0x222   :  { %818 = vsyncpa [#allocation6], 1 }
 0x223   :  { %819 = vsyncpa [#allocation9], 1 }
 0x224   :  { %820 = vsyncpa [#allocation4], 1 }
 0x225   :  { %822 = vsyncpa [#allocation4 + $0x1], 1 }

// kernel: tpu_custom_call.1
= control target key start
LH: loop header
LB: loop body
LE: loop exit
PB: predicated region body
PF: predicated region fallthrough
CT: control target
= control target key end

     0   :  { %s1657_s0 = inlined_call_operand.hbm [shape: f32[32,128], index: 0, kind: input, shape index: {}]   ;;  %s1658_s1 = inlined_call_operand.hbm [shape: bf16[128,128], index: 1, kind: input, shape index: {}]   ;;  %s1659_s2 = inlined_call_operand.vmem [shape: f32[1,128], index: 2, kind: input, shape index: {}]   ;;  %s1660_s3 = inlined_call_operand.hbm [shape: bf16[128,128], index: 3, kind: input, shape index: {}]   ;;  %s1661_s4 = inlined_call_operand.vmem [shape: f32[1,128], index: 4, kind: input, shape index: {}]   ;;  %s1662_s5 = inlined_call_operand.hbm [shape: bf16[128,128], index: 5, kind: input, shape index: {}]   ;;  %s1663_s6 = inlined_call_operand.vmem [shape: f32[1,128], index: 6, kind: input, shape index: {}]   ;;  %s1664_s7 = inlined_call_operand.hbm [shape: bf16[128,128], index: 7, kind: input, shape index: {}]   ;;  %s1665_s8 = inlined_call_operand.vmem [shape: f32[1,128], index: 8, kind: input, shape index: {}]   ;;  %s1666_s9 = inlined_call_operand.hbm [shape: bf16[32,128], index: 9, kind: output, shape index: {}]  }
   0x1   :  { %1667 = sst [smem:[#allocation16_spill]] %s1658_s1 }
   0x2   :  { %1668 = sst [smem:[#allocation17_spill]] %s1660_s3 }
   0x3   :  { %1669 = sst [smem:[#allocation18_spill]] %s1662_s5 }
   0x4   :  { %14 = vsyncpa [#allocation3], 0 }
   0x5   :  { %16 = vsyncpa [#allocation3 + $0x1], 0 }
   0x6   :  { %17 = vsyncpa [#allocation6], 0 }
   0x7   :  { %18 = vsyncpa [#allocation9], 0 }
   0x8   :  { %19 = vsyncpa [#allocation4], 0 }
   0x9   :  { %21 = vsyncpa [#allocation4 + $0x1], 0  ;;  %s1477_s30 = smov 0   ;;  %s1479_s10 = smov 0  }
   0xa   :  { %s1481_s11 = smov 0   ;;  %s1483_s12 = smov 0  }
   0xb LB: > { %s1498_s13 = sadd.s32 4294967295, %s1415_s12   ;;  %s905_s14 = sadd.s32 4294967294, %s1415_s12   ;;  %s1415_s12 = sphi %s1483_s12, %s1683_s12   ;;  %s1411_s11 = sphi %s1481_s11, %s1682_s11   ;;  %s1407_s10 = sphi %s1479_s10, %s1681_s10   ;;  %s1403_s30 = sphi %s1477_s30, %s1680_s30  }
   0xc   : > { %p47_p0 = scmp.ne.s32.totalorder %s1407_s10, %s1403_s30  ;;  %p48_p1 = scmp.eq.s32.totalorder %s1498_s13, 0 }
   0xd   : > { %p239_p2 = scmp.eq.s32.totalorder %s1498_s13, 1  ;;  %p245_p3 = scmp.eq.s32.totalorder %s905_s14, 1 }
   0xe   : > { %p1507_p4 = por %p48_p1, %p47_p0  ;;  %p906_p5 = scmp.ge.s32.totalorder %s1415_s12, 1 }
   0xf   : > { %p1512_p6 = por %p245_p3, %p47_p0  ;;  %p252_p7 = scmp.lt.s32.totalorder %s1415_s12, 3 }
  0x10   : > { %s1672_s1 = sld [smem:[#allocation16_spill]]  ;;  %s1417_s21 = smov [#allocation5]  }
  0x11   : > { %p1520_p8 = pnand %p906_p5, %p252_p7  ;;  %s265_s22 = sshll.u32 %s1417_s21, 4  ;;  %s266_s22 = int_to_ptr.vmem [resolvable:$true] %s265_s22 }
  0x12   : > { %s1675_s5 = sld [smem:[#allocation18_spill]]  ;;  %s1418_s27 = smov 64  }
  0x13   : > { %p1114_p9 = pneg %p1520_p8  ;;  %s1419_s28 = smov 4  }
  0x14   : > { %s1420_s29 = smov [#allocation8]   ;;  %s1676_s3 = sld [smem:[#allocation17_spill]] }
  0x15   : > { %p1528_p10 = pnand %p1114_p9, %p48_p1  ;;  %s299_s14 = sshll.u32 %s1420_s29, 4  ;;  %s300_s14 = int_to_ptr.vmem [resolvable:$true] %s299_s14 }
  0x16   : > { %s263_s19 = sshll.u32 %s1672_s1, 4  ;;  %s1422_s17 = smov [#allocation10]   ;;  %s264_s19 = int_to_ptr.hbm [resolvable:$true] %s263_s19 }
  0x17   : > { %1117 = dma.hbm_to_vmem [thread:$0]  (!%p1528_p10), %s264_s19, 1024, %s266_s22, [#allocation6], %s1418_s27, %s1418_s27, %s1419_s28  }
  0x18   : > { %s297_s26 = sshll.u32 %s1675_s5, 4  ;;  %s314_s19 = sshll.u32 %s1664_s7, 4  ;;  %s298_s26 = int_to_ptr.hbm [resolvable:$true] %s297_s26  ;;  %s315_s19 = int_to_ptr.hbm [resolvable:$true] %s314_s19 }
  0x19   : > { %1123 = dma.hbm_to_vmem [thread:$0]  (!%p1528_p10), %s298_s26, 1024, %s300_s14, [#allocation9], %s1418_s27, %s1418_s27, %s1419_s28  }
  0x1a   : > { %s280_s21 = sshll.u32 %s1676_s3, 4  ;;  %s1421_s22 = smov [#allocation7]   ;;  %s281_s21 = int_to_ptr.hbm [resolvable:$true] %s280_s21 }
  0x1b   : > { %s282_s29 = sshll.u32 %s1421_s22, 4  ;;  %s316_s18 = sshll.u32 %s1422_s17, 4  ;;  %s283_s29 = int_to_ptr.vmem [resolvable:$true] %s282_s29  ;;  %s317_s18 = int_to_ptr.vmem [resolvable:$true] %s316_s18 }
  0x1c   : > { %1120 = dma.hbm_to_vmem [thread:$0]  (!%p1528_p10), %s281_s21, 1024, %s283_s29, [#allocation6], %s1418_s27, %s1418_s27, %s1419_s28  }
  0x1d   : > { %1126 = dma.hbm_to_vmem [thread:$0]  (!%p1528_p10), %s315_s19, 1024, %s317_s18, [#allocation9], %s1418_s27, %s1418_s27, %s1419_s28  }
  0x1e   : > { %s1551_s26 = sadd.s32 1, %s1415_s12   ;;  %s34_s14 = sadd.s32 1, %s1411_s11 }
  0x1f   : > { %s31_s24 = ssub.s32 %s1415_s12, %s1551_s26  ;;  %p41_p12 = scmp.ne.s32.totalorder %s1411_s11, %s1407_s10 }
  0x20   : > { %p32_p13 = scmp.eq.s32.totalorder %s31_s24, 0  ;;  %p42_p0 = scmp.eq.s32.totalorder %s1415_s12, 0 }
  0x21   : > { %p1561_p3 = por %p239_p2, %p41_p12  ;;  %p1139_p5 = scmp.lt.s32.totalorder %s1415_s12, 2 }
  0x22   : > { %s1567_s21 = scalar_select %p32_p13, %s1411_s11, %s34_s14  }
  0x23   : > { %p43_p7 = por %p42_p0, %p41_p12  ;;  %s333_s22 = sand.u32 1, %s1411_s11  }
  0x24   : > { %s912_s23 = sshll.u32 %s333_s22, 4  ;;  %s1055_s27 = sshll.u32 %s1415_s12, 4 }
  0x25   : > { %s342_s29 = scalar_lea.hbm %s1657_s0, %s1055_s27  ;;  %s337_s17 = scalar_lea.vmem [#allocation2], %s912_s23 }
  0x26   : > { %s345_s18 = sshll.u32 %s337_s17, 4  ;;  %s343_s24 = sshll.u32 %s342_s29, 4  ;;  %s346_s18 = int_to_ptr.vmem [resolvable:$true] %s345_s18  ;;  %s344_s24 = int_to_ptr.hbm [resolvable:$true] %s343_s24 }
  0x27   : > { %p1574_p2 = pnand %p1139_p5, %p43_p7  ;;  %s334_s14 = scalar_lea.sflag [#allocation3], %s333_s22 }
  0x28   : > { %s1311_s3 = sshra.s32 %s344_s24, 4  ;;  %s1318_s28 = scalar_lea.hbm %s1657_s0, 32  ;;  %s1312_s3 = int_to_ptr.hbm [resolvable:$true] %s1311_s3 }
  0x29   : > { %s1313_s5 = scalar_lea.hbm %s1312_s3, 16  ;;  %p1315_p10 = pneg %p1574_p2 }
  0x2a   : > { %p1314_p9 = scmp.ne.s32.totalorder %s1312_s3, %s1313_s5  ;;  %p1319_p0 = scmp.lt.s32.totalorder %s1312_s3, %s1657_s0 }
  0x2b   : > { %p1320_p5 = scmp.lt.s32.totalorder %s1318_s28, %s1313_s5 }
  0x2c   : > { %p1316_p12 = pnand %p1315_p10, %p1314_p9 }
  0x2d   : > { %p1321_p7 = por %p1320_p5, %p1319_p0 }
  0x2e   : > { %p1317_p13 = pneg %p1316_p12 }
  0x30   : > { %p1322_p11 = pnand %p1321_p7, %p1317_p13 }
  0x32   : > { %1325 = shalt.err (!%p1322_p11)
}
  0x33   : > { %s1423_s22 = smov 128   ;;  %s1424_s17 = smov 8  }
  0x34   : > { %1130 = dma.hbm_to_vmem [thread:$0]  (!%p1574_p2), %s344_s24, 256, %s346_s18, %s334_s14, %s1423_s22, %s1423_s22, %s1424_s17  }
  0x35   : > { %357 = sbr.rel (%p1520_p8) target bundleno = 530 (0x212), region = 56  ;;  %s1591_s27 = sand.u32 (!%p1520_p8), 1, %s1407_s10  }
  0x36   : > { %s916_s23 = sshll.u32 (!%p1520_p8), %s1591_s27, 4  ;;  %s360_s3 = scalar_lea.sflag (!%p1520_p8), [#allocation3], %s1591_s27 }
  0x37   : > { %s1595_s5 = scalar_lea.vmem (!%p1520_p8), [#allocation2], %s916_s23 }
  0x3a   : > { %1386 = dma.done.wait (%p1507_p4), %s360_s3, 256  }
  0x3b   : > { %1388 = vsyncadd (%p1507_p4), %s360_s3, 4294967040 }
  0x3c   : > { %1390 = dma.done.wait (%p48_p1), [#allocation6], 2048  }
  0x3d   : > { %1392 = vsyncadd (%p48_p1), [#allocation6], 4294965248 }
  0x3e   : > { %1394 = dma.done.wait (%p48_p1), [#allocation9], 2048  }
  0x3f   : > { %1396 = vsyncadd (%p48_p1), [#allocation9], 4294965248  ;;  %v1063_v0 = vld [vmem:[#allocation5 + $0x38] sm:$0xff]  ;;  %v1062_v1 = vld [vmem:[#allocation5 + $0x30] sm:$0xff]  ;;  %s921_s29 = sshll.u32 %s1591_s27, 3  ;;  %s1088_s22 = sshll.u32 %s1498_s13, 3 }
  0x40   : > { %492 = vmatpush.bf16.msra.mxu0 %v1063_v0  ;;  %v1071_v2 = vld [vmem:[#allocation7 + $0x38] sm:$0xff]  ;;  %v1070_v3 = vld [vmem:[#allocation7 + $0x30] sm:$0xff]  ;;  %v1061_v4 = vld [vmem:[#allocation5 + $0x28] sm:$0xff]  ;;  %s790_s3 = scalar_lea.hbm %s1666_s9, %s1088_s22  ;;  %s779_s13 = scalar_lea.sflag [#allocation4], %s1591_s27 }
  0x41   : > { %581 = vmatpush.bf16.msra.mxu1 %v1071_v2  ;;  %v1069_v5 = vld [vmem:[#allocation7 + $0x28] sm:$0xff]  ;;  %v1060_v6 = vld [vmem:[#allocation5 + $0x20] sm:$0xff]  ;;  %v1059_v8 = vld [vmem:[#allocation5 + $0x18] sm:$0xff]  ;;  %s793_s15 = sshll.u32 %s790_s3, 4  ;;  %s1361_s28 = scalar_lea.hbm %s1666_s9, 16  ;;  %s794_s15 = int_to_ptr.hbm [resolvable:$true] %s793_s15 }
  0x42   : > { %v1068_v7 = vld [vmem:[#allocation7 + $0x20] sm:$0xff]  ;;  %v1058_v9 = vld [vmem:[#allocation5 + $0x10] sm:$0xff]  ;;  %v1057_v10 = vld [vmem:[#allocation5 + $0x8] sm:$0xff]  ;;  %s1355_s20 = sshra.s32 %s794_s15, 4  ;;  %s1356_s20 = int_to_ptr.hbm [resolvable:$true] %s1355_s20 }
  0x43   : > { %v1056_v11 = vld [vmem:[#allocation5] sm:$0xff]  ;;  %v422_v13 = vld [vmem:[%s1595_s5 + $0x8] sm:$0xff]  ;;  %v1066_v16 = vld [vmem:[#allocation7 + $0x10] sm:$0xff]  ;;  %s1357_s18 = scalar_lea.hbm %s1356_s20, 8  ;;  %p1362_p11 = scmp.lt.s32.totalorder %s1356_s20, %s1666_s9 }
  0x44   : > { %493 = vmatpush.bf16.msra.mxu0 %v1062_v1  ;;  %v421_v12 = vld [vmem:[%s1595_s5] sm:$0xff]  ;;  %v1067_v15 = vld [vmem:[#allocation7 + $0x18] sm:$0xff]  ;;  %v1065_v17 = vld [vmem:[#allocation7 + $0x8] sm:$0xff]  ;;  %s418_s5 = scalar_lea.vmem [#allocation11], %s921_s29  ;;  %p1358_p1 = scmp.ne.s32.totalorder %s1356_s20, %s1357_s18 }
  0x45   : > { %582 = vmatpush.bf16.msra.mxu1 %v1070_v3  ;;  %v423_v14 = vpack.c.bf16 %v422_v13, %v421_v12  ;;  %v1064_v18 = vld [vmem:[#allocation7] sm:$0xff]  ;;  %v1087_v19 = vld [vmem:[#allocation10 + $0x38] sm:$0xff]  ;;  %v1086_v21 = vld [vmem:[#allocation10 + $0x30] sm:$0xff]  ;;  %s791_s1 = sshll.u32 %s418_s5, 4  ;;  %p1363_p2 = scmp.lt.s32.totalorder %s1361_s28, %s1357_s18  ;;  %s792_s1 = int_to_ptr.vmem [resolvable:$true] %s791_s1 }
  0x46   : > { %v1079_v20 = vld [vmem:[#allocation8 + $0x38] sm:$0xff]  ;;  %758 = vmatpush.bf16.msra.mxu3 %v1087_v19  ;;  %v1078_v22 = vld [vmem:[#allocation8 + $0x30] sm:$0xff]  ;;  %v1085_v23 = vld [vmem:[#allocation10 + $0x28] sm:$0xff]  ;;  %p1359_p4 = pnand %p1358_p1, %p1561_p3 }
  0x47   : > { %670 = vmatpush.bf16.msra.mxu2 %v1079_v20  ;;  %v1077_v24 = vld [vmem:[#allocation8 + $0x28] sm:$0xff]  ;;  %v1084_v25 = vld [vmem:[#allocation10 + $0x20] sm:$0xff]  ;;  %v1083_v27 = vld [vmem:[#allocation10 + $0x18] sm:$0xff]  ;;  %p1364_p9 = por %p1363_p2, %p1362_p11 }
  0x48   : > { %494 = vmatpush.bf16.msra.mxu0 %v1061_v4  ;;  %v1076_v26 = vld [vmem:[#allocation8 + $0x20] sm:$0xff]  ;;  %v1082_v38 = vld [vmem:[#allocation10 + $0x10] sm:$0xff]  ;;  %v1075_v39 = vld [vmem:[#allocation8 + $0x18] sm:$0xff]  ;;  %p1360_p8 = pneg %p1359_p4 }
  0x49   : > { %583 = vmatpush.bf16.msra.mxu1 %v1069_v5  ;;  %v1187_v29 = vld [vmem:[%s1659_s2] ss:$0 sm:$0xff]  ;;  %v1081_v40 = vld [vmem:[#allocation10 + $0x8] sm:$0xff]  ;;  %v1074_v41 = vld [vmem:[#allocation8 + $0x10] sm:$0xff] }
  0x4a   : > { %759 = vmatpush.bf16.msra.mxu3 %v1086_v21  ;;  %v1080_v42 = vld [vmem:[#allocation10] sm:$0xff]  ;;  %v1073_v43 = vld [vmem:[#allocation8 + $0x8] sm:$0xff]  ;;  %p1365_p10 = pnand %p1364_p9, %p1360_p8 }
  0x4b   : > { %671 = vmatpush.bf16.msra.mxu2 %v1078_v22  ;;  %v1072_v44 = vld [vmem:[#allocation8] sm:$0xff] }
  0x4c   : > { %495 = vmatpush.bf16.msra.mxu0 %v1060_v6  ;;  %v1188_v46 = vld [vmem:[%s1661_s4] ss:$0 sm:$0xff] }
  0x4d   : > { %584 = vmatpush.bf16.msra.mxu1 %v1068_v7  ;;  %v1190_v56 = vld [vmem:[%s1663_s6] ss:$0 sm:$0xff] }
  0x4e   : > { %760 = vmatpush.bf16.msra.mxu3 %v1085_v23  ;;  %v1189_v59 = vld [vmem:[%s1665_s8] ss:$0 sm:$0xff] }
  0x4f   : > { %672 = vmatpush.bf16.msra.mxu2 %v1077_v24 }
  0x50   : > { %496 = vmatpush.bf16.msra.mxu0 %v1059_v8 }
  0x51   : > { %585 = vmatpush.bf16.msra.mxu1 %v1067_v15 }
  0x52   : > { %761 = vmatpush.bf16.msra.mxu3 %v1084_v25 }
  0x53   : > { %673 = vmatpush.bf16.msra.mxu2 %v1076_v26 }
  0x54   : > { %497 = vmatpush.bf16.msra.mxu0 %v1058_v9 }
  0x55   : > { %586 = vmatpush.bf16.msra.mxu1 %v1066_v16 }
  0x56   : > { %762 = vmatpush.bf16.msra.mxu3 %v1083_v27 }
  0x57   : > { %674 = vmatpush.bf16.msra.mxu2 %v1075_v39 }
  0x58   : > { %498 = vmatpush.bf16.msra.mxu0 %v1057_v10 }
  0x59   : > { %587 = vmatpush.bf16.msra.mxu1 %v1065_v17 }
  0x5a   : > { %763 = vmatpush.bf16.msra.mxu3 %v1082_v38 }
  0x5b   : > { %675 = vmatpush.bf16.msra.mxu2 %v1074_v41 }
  0x5c   : > { %499 = vmatpush.bf16.msra.mxu0 %v1056_v11 }
  0x5d   : > { %588 = vmatpush.bf16.msra.mxu1 %v1064_v18 }
  0x5e   : > { %764 = vmatpush.bf16.msra.mxu3 %v1081_v40 }
  0x5f   : > { %500 = vmatmul.bf16.vlgmr.msra.gmra.mxu0 %v423_v14  ;;  %676 = vmatpush.bf16.msra.mxu2 %v1073_v43 }
  0x62   : > { %765 = vmatpush.bf16.msra.mxu3 %v1080_v42 }
  0x63   : > { %677 = vmatpush.bf16.msra.mxu2 %v1072_v44 }
  0x65   : > { %766 = vmatmul.bf16.vlgmr.msra.gmra.mxu3 %v423_v14 }
  0xdc   : > { %v501_v28 = vpop.f32.mrf.mxu0 }
  0xdd   : > { %v502_v30 = vadd.f32 %v1187_v29, %v501_v28 }
  0xdf   : > { %v508_v32 = vmul.f32 0.01, %v502_v30  ;;  %vm506_vm0 = vcmp.gt.f32.partialorder %v502_v30, 0.0 }
  0xe1   : > { %v510_v35 = vsel %vm506_vm0, %v502_v30, %v508_v32 }
  0xe4   : > { %v503_v31 = vpop.f32.mrf.mxu0 }
  0xe5   : > { %v504_v33 = vadd.f32 %v1187_v29, %v503_v31 }
  0xe7   : > { %v509_v34 = vmul.f32 0.01, %v504_v33  ;;  %vm507_vm1 = vcmp.gt.f32.partialorder %v504_v33, 0.0 }
  0xe8   : > { %v767_v55 = vpop.f32.mrf.mxu3 }
  0xe9   : > { %v511_v36 = vsel %vm507_vm1, %v504_v33, %v509_v34  ;;  %v768_v0 = vadd.f32 %v1189_v59, %v767_v55 }
  0xea   : > { %v512_v37 = vpack.c.bf16 %v511_v36, %v510_v35 }
  0xec   : > { %589 = vmatmul.bf16.vlgmr.msra.gmra.mxu1 %v512_v37 }
  0xf0   : > { %v769_v62 = vpop.f32.mrf.mxu3 }
  0xf1   : > { %v770_v3 = vadd.f32 %v1189_v59, %v769_v62 }
 0x169   : > { %v590_v45 = vpop.f32.mrf.mxu1 }
 0x16a   : > { %v591_v47 = vadd.f32 %v1188_v46, %v590_v45 }
 0x16c   : > { %v597_v49 = vmul.f32 0.01, %v591_v47  ;;  %vm595_vm2 = vcmp.gt.f32.partialorder %v591_v47, 0.0 }
 0x16e   : > { %v599_v52 = vsel %vm595_vm2, %v591_v47, %v597_v49 }
 0x171   : > { %v592_v48 = vpop.f32.mrf.mxu1 }
 0x172   : > { %v593_v50 = vadd.f32 %v1188_v46, %v592_v48 }
 0x174   : > { %v598_v51 = vmul.f32 0.01, %v593_v50  ;;  %vm596_vm3 = vcmp.gt.f32.partialorder %v593_v50, 0.0 }
 0x176   : > { %v600_v53 = vsel %vm596_vm3, %v593_v50, %v598_v51 }
 0x177   : > { %v601_v54 = vpack.c.bf16 %v600_v53, %v599_v52 }
 0x179   : > { %678 = vmatmul.bf16.vlgmr.msra.gmra.mxu2 %v601_v54 }
 0x1fc   : > { %v679_v57 = vpop.f32.mrf.mxu2 }
 0x1fd   : > { %v680_v58 = vadd.f32 %v1190_v56, %v679_v57 }
 0x1ff   : > { %v686_v60 = vmul.f32 0.01, %v680_v58  ;;  %vm684_vm4 = vcmp.gt.f32.partialorder %v680_v58, 0.0 }
 0x201   : > { %v688_v1 = vsel %vm684_vm4, %v680_v58, %v686_v60 }
 0x202   : > { %v772_v5 = vadd.f32 %v768_v0, %v688_v1 }
 0x204   : > { %v681_v61 = vpop.f32.mrf.mxu2 }
 0x205   : > { %v682_v63 = vadd.f32 %v1190_v56, %v681_v61 }
 0x207   : > { %vm685_vm5 = vcmp.gt.f32.partialorder %v682_v63, 0.0  ;;  %v687_v2 = vmul.f32 0.01, %v682_v63 }
 0x209   : > { %v689_v4 = vsel %vm685_vm5, %v682_v63, %v687_v2 }
 0x20a   : > { %v773_v6 = vadd.f32 %v770_v3, %v689_v4 }
 0x20c   : > { %v1092_v7 = vpack.c.bf16 %v773_v6, %v772_v5 }
 0x20e   : > { %1093 = vst [vmem:[%s418_s5] sm:$0xff] %v1092_v7  }
 0x20f   : > { %1368 = shalt.err (!%p1365_p10)
}
 0x210   : > { %s1425_s27 = smov 64   ;;  %s1426_s22 = smov 4  }
 0x211   : > { %1112 = dma.vmem_to_hbm [thread:$0]  (%p1561_p3), %s792_s1, 128, %s794_s15, %s779_s13, %s1425_s27, %s1425_s27, %s1426_s22  }
 0x212 PF: > { %s808_s17 = sand.u32 1, %s1403_s30   ;;  %p1679_p12 = scmp.ge.s32.totalorder %s1415_s12, 2 }
 0x213   : > { %s809_s23 = scalar_lea.sflag [#allocation4], %s808_s17 }
 0x214   : > { %p1132_p13 = pnand %p1679_p12, %p1512_p6 }
 0x216   : > { %p1133_p0 = pneg %p1132_p13 }
 0x218   : > { %1398 = dma.done.wait (%p1133_p0), %s809_s23, 128  }
 0x219   : > { %1400 = vsyncadd (%p1133_p0), %s809_s23, 4294967168  ;;  %p24_p5 = scmp.ge.s32.totalorder %s1551_s26, 4   ;;  %s1680_s30 = smov %s1407_s10 }
 0x21a   : > { %s1681_s10 = smov %s1411_s11  ;;  %s1682_s11 = smov %s1567_s21 }
 0x21b   : > { %s1683_s12 = smov %s1551_s26  ;;  %26 = sbr.rel (!%p24_p5) target bundleno = 11 (0xb), region = 117 }
 0x220   :  { %815 = vsyncpa [#allocation3], 1 }
 0x221   :  { %817 = vsyncpa [#allocation3 + $0x1], 1 }
 0x222   :  { %818 = vsyncpa [#allocation6], 1 }
 0x223   :  { %819 = vsyncpa [#allocation9], 1 }
 0x224   :  { %820 = vsyncpa [#allocation4], 1 }
 0x225   :  { %822 = vsyncpa [#allocation4 + $0x1], 1 }

</bundles_post_ra>
